<compile_context>
chip_gen: v7x
topology: tpu7x:2x2x1
jax: 0.10.0
libtpu: 0.0.40
codegen_flags: <defaults>
</compile_context>

<pallas_src>
import functools
import math

import jax
import jax.numpy as jnp
from jax.experimental import pallas as pl
from jax.experimental.pallas import tpu as pltpu


def _self_att_pool_kernel(xq_ref, xkv_ref, o_ref,
                          q_sc, m_sc, l_sc, acc_sc, *, scale, exp_dtype):
    q_idx = pl.program_id(1)
    k_idx = pl.program_id(2)
    nk = pl.num_programs(2)

    # Fresh batch block: reset the pooled max directly in the resident output.
    @pl.when(jnp.logical_and(q_idx == 0, k_idx == 0))
    def _():
        o_ref[...] = jnp.full_like(o_ref, -jnp.inf)

    # Fresh q tile: stage the scaled/cast q once (hoisted out of the kv loop)
    # and reset the online-softmax stats.
    @pl.when(k_idx == 0)
    def _():
        q_sc[...] = (xq_ref[...].astype(jnp.float32) * scale).astype(jnp.bfloat16)
        m_sc[...] = jnp.full_like(m_sc, -jnp.inf)
        l_sc[...] = jnp.zeros_like(l_sc)
        acc_sc[...] = jnp.zeros_like(acc_sc)

    q = q_sc[...]           # (TB, TQ, D) bf16, already scaled
    kv = xkv_ref[...]       # (TB, TK, D) bf16 (cast once in the wrapper)

    # Scores contract the last (D) axes of both operands -> no materialized kv
    # transpose (check with pl.lower_as_mlir if in doubt on a new jax version).
    s = jax.lax.dot_general(
        q, kv,
        dimension_numbers=(((2,), (2,)), ((0,), (0,))),
        preferred_element_type=jnp.float32)                  # (TB, TQ, TK) f32

    m_prev = m_sc[...]
    m_new = jnp.maximum(m_prev, jnp.max(s, axis=-1, keepdims=True))
    alpha = jnp.exp(m_prev - m_new)                          # f32, tiny
    # exp in bf16 where the EUP supports it (v6e/v7x); m/l/acc stay f32.
    p = jnp.exp((s - m_new).astype(exp_dtype))

    l_sc[...] = alpha * l_sc[...] + jnp.sum(p, axis=-1, keepdims=True,
                                            dtype=jnp.float32)
    pv = jax.lax.dot_general(
        p.astype(jnp.bfloat16), kv,
        dimension_numbers=(((2,), (1,)), ((0,), (0,))),
        preferred_element_type=jnp.float32)                  # (TB, TQ, D) f32
    acc_sc[...] = alpha * acc_sc[...] + pv
    m_sc[...] = m_new

    # Fold into the pooled max only once this q tile's softmax rows are fully
    # normalized (after the last kv step).  Exact reciprocal so near-tied rows
    # resolve the same way as the reference.
    @pl.when(k_idx == nk - 1)
    def _():
        y = acc_sc[...] * pl.reciprocal(l_sc[...], approx=False)   # (TB,TQ,D)
        o_ref[...] = jnp.maximum(
            o_ref[...], jnp.max(y, axis=1, keepdims=True).astype(o_ref.dtype))


def _tpu_generation():
    try:
        kind = jax.devices()[0].device_kind.lower()
    except Exception:
        return 0
    for g in (7, 6, 5, 4):
        if f"v{g}" in kind:
            return g
    return 0


def _vmem_caps(gen):
    """Returns (soft working budget, hard vmem_limit cap) in bytes."""
    cap = None
    try:
        cap = int(pltpu.get_tpu_info().vmem_capacity_bytes)
    except Exception:
        cap = None
    if cap is None:
        if gen >= 7:
            cap = 64 << 20            # v7x: 64 MiB per TensorCore
        elif gen >= 4:
            cap = 128 << 20           # v4/v5e/v6e: 128 MiB
        else:
            cap = 64 << 20            # unknown: be conservative
    return int(cap * 0.75), int(cap * 0.875)


def _pick_tq(s):
    if s <= 256:
        return s
    for t in (256, 128):
        if s % t == 0:
            return t
    return s                          # ragged S: single whole-S tile


def _tk_candidates(s, gen):
    # v7x (64 MiB VMEM): keep kv tiles bounded; v5e/v6e: allow whole-S kv tile
    # so kv is DMA'd once per batch block instead of S/tq times.
    cap = 512 if gen >= 7 else s
    cands = []
    for t in (s, 8192, 4096, 2048, 1024, 512, 256, 128):
        if t <= s and t <= cap and s % t == 0 and t not in cands:
            cands.append(t)
    return cands or [s]               # largest first; ragged fallback: whole S


def _tb_candidates(b, prefer_batch_split):
    cands = [t for t in (4, 2, 1) if b % t == 0]     # tb > 4 buys nothing
    if prefer_batch_split and b >= 2:
        # v7x: keep the batch grid extent >= 2 so both TensorCores get work.
        split = [t for t in cands if b // t >= 2]
        if split:
            cands = split
    return cands                      # largest first


def _vmem_required(tb, tq, tk, d, out_itemsize, kv_bufs):
    in_item = 2                                     # bf16 inputs
    q_blk = 2 * tb * tq * d * in_item               # double-buffered q blocks
    kv_blk = kv_bufs * tb * tk * d * in_item        # kv blocks
    o_blk = 2 * tb * 1 * d * out_itemsize           # resident output block
    scratch = (tb * tq * d * 2                      # staged scaled q (bf16)
               + tb * tq * d * 4                    # f32 numerator accumulator
               + 2 * tb * tq * 128 * 4)             # m, l (lane-padded)
    temps = 3 * tb * tq * tk * 4                    # s / p / exp f32 temporaries
    return int((q_blk + kv_blk + o_blk + scratch + temps) * 1.2)  # +20% headroom


def _select_tiles(b, s, d, out_itemsize, budget, gen):
    tq = _pick_tq(s)
    tk_cands = _tk_candidates(s, gen)
    tb_cands = _tb_candidates(b, prefer_batch_split=(gen >= 7))
    # Prefer the largest kv tile (fewest kv re-streams), then the largest tb
    # that still fits the VMEM budget.
    for tk in tk_cands:
        for tb in tb_cands:
            if _vmem_required(tb, tq, tk, d, out_itemsize, 2) <= budget:
                return tb, tq, tk
    return 1, tq, tk_cands[-1]        # most conservative fallback


def self_att_pooling(x, num_heads, keepdims=False):
    """x: (B, S, D). Returns (B, D), or (B, 1, D) if keepdims."""
    B, S, D = x.shape
    n_state = D // num_heads
    scale = 1.0 / math.sqrt(n_state)

    out_dtype = x.dtype
    out_item = jnp.dtype(out_dtype).itemsize
    # Cast once at the boundary: halves HBM traffic and input-block VMEM;
    # all accumulation stays f32 inside the kernel.
    xb = x.astype(jnp.bfloat16)

    gen = _tpu_generation()
    budget, limit_cap = _vmem_caps(gen)
    tb, tq, tk = _select_tiles(B, S, D, out_item, budget, gen)
    nk = S // tk

    # kv is the only block whose index changes every inner step: give it a 3rd
    # pipeline buffer when it is actually re-streamed and the budget allows it.
    kv_bufs = 2
    if nk > 1 and _vmem_required(tb, tq, tk, D, out_item, 3) <= budget:
        kv_bufs = 3
    vmem_req = _vmem_required(tb, tq, tk, D, out_item, kv_bufs)
    vmem_limit = int(min(max(vmem_req, 32 << 20), limit_cap))

    if kv_bufs == 3:
        kv_spec = pl.BlockSpec((tb, tk, D), lambda b, q, k: (b, k, 0),
                               pipeline_mode=pl.Buffered(3))
    else:
        kv_spec = pl.BlockSpec((tb, tk, D), lambda b, q, k: (b, k, 0))

    # bf16 exponentials only where the EUP supports them (v6e / v7x).
    exp_dtype = jnp.bfloat16 if gen >= 6 else jnp.float32

    kernel = functools.partial(_self_att_pool_kernel, scale=scale,
                               exp_dtype=exp_dtype)

    out = pl.pallas_call(
        kernel,
        out_shape=jax.ShapeDtypeStruct((B, 1, D), out_dtype),
        grid_spec=pltpu.PrefetchScalarGridSpec(
            num_scalar_prefetch=0,
            grid=(B // tb, S // tq, S // tk),
            in_specs=[
                pl.BlockSpec((tb, tq, D), lambda b, q, k: (b, q, 0)),  # q view
                kv_spec,                                               # kv view
            ],
            out_specs=pl.BlockSpec((tb, 1, D), lambda b, q, k: (b, 0, 0)),
            scratch_shapes=[
                pltpu.VMEM((tb, tq, D), jnp.bfloat16),   # staged scaled q
                pltpu.VMEM((tb, tq, 1), jnp.float32),    # running row max m
                pltpu.VMEM((tb, tq, 1), jnp.float32),    # running denom  l
                pltpu.VMEM((tb, tq, D), jnp.float32),    # running numerator acc
            ]),
        compiler_params=pltpu.CompilerParams(
            dimension_semantics=("parallel", "arbitrary", "arbitrary"),
            vmem_limit_bytes=vmem_limit),
    )(xb, xb)

    if keepdims:
        return out                    # (B, 1, D)
    return out[:, 0, :]               # (B, D)


def _reference(x, num_heads, keepdims=False):
    n_state = x.shape[-1] // num_heads
    s = jnp.matmul(x, jnp.swapaxes(x, -2, -1)) * (1.0 / math.sqrt(n_state))
    attn = jax.nn.softmax(s, axis=-1)
    return jnp.max(jnp.matmul(attn, x), axis=-2, keepdims=keepdims)


if __name__ == "__main__":
    key = jax.random.PRNGKey(0)
    B, S, D = 2, 8, 32
    num_heads = 4
    x = jax.random.normal(key, (B, S, D), dtype=jnp.float32)

    out = jax.block_until_ready(self_att_pooling(x, num_heads, keepdims=False))
    ref = _reference(x, num_heads, keepdims=False)
    assert out.shape == ref.shape == (B, D)
    # bf16 MXU operands (and bf16 exp on v6e/v7x) => loosened tolerance vs f32.
    assert jnp.allclose(out, ref, atol=5e-2, rtol=5e-2), (
        f"max abs err = {jnp.max(jnp.abs(out - ref))}")

    out_k = jax.block_until_ready(self_att_pooling(x, num_heads, keepdims=True))
    assert out_k.shape == (B, 1, D)
    assert jnp.allclose(out_k[:, 0, :], ref, atol=5e-2, rtol=5e-2)

    print("KERNEL_OK")
</pallas_src>

<mosaic_0001>
module attributes {stable_mosaic.version = 11 : i64} {
  func.func @_self_att_pool_kernel(%arg0: i32, %arg1: i32, %arg2: i32, %arg3: memref<2x8x32xbf16, #tpu.memory_space<vmem>>, %arg4: memref<2x8x32xbf16, #tpu.memory_space<vmem>>, %arg5: memref<2x1x32xf32, #tpu.memory_space<vmem>>, %arg6: memref<2x8x32xbf16, #tpu.memory_space<vmem>>, %arg7: memref<2x8x1xf32, #tpu.memory_space<vmem>>, %arg8: memref<2x8x1xf32, #tpu.memory_space<vmem>>, %arg9: memref<2x8x32xf32, #tpu.memory_space<vmem>>) attributes {dimension_semantics = [#tpu.dimension_semantics<parallel>, #tpu.dimension_semantics<arbitrary>, #tpu.dimension_semantics<arbitrary>], iteration_bounds = array<i64: 1, 1, 1>, scalar_prefetch = 0 : i64, scratch_operands = 4 : i64, tpu.core_type = #tpu.core_type<tc>, window_params = [{transform_indices = @transform_0, window_bounds = array<i64: 2, 8, 32>}, {transform_indices = @transform_1, window_bounds = array<i64: 2, 8, 32>}, {transform_indices = @transform_2, window_bounds = array<i64: 2, 1, 32>}]} {
    %c0_i32 = arith.constant 0 : i32
    %0 = arith.cmpi eq, %arg1, %c0_i32 : i32
    %c0_i32_0 = arith.constant 0 : i32
    %1 = arith.cmpi eq, %arg2, %c0_i32_0 : i32
    %2 = arith.andi %0, %1 : i1
    %3 = arith.extui %2 : i1 to i32
    %c0_i32_1 = arith.constant 0 : i32
    %4 = arith.cmpi ne, %3, %c0_i32_1 : i32
    scf.if %4 {
      %cst_32 = arith.constant 0xFF800000 : f32
      %37 = vector.broadcast %cst_32 : f32 to vector<2x1x32xf32>
      %c0_33 = arith.constant 0 : index
      %c0_34 = arith.constant 0 : index
      %c0_35 = arith.constant 0 : index
      %38 = vector.load %arg5[%c0_33, %c0_34, %c0_35] : memref<2x1x32xf32, #tpu.memory_space<vmem>>, vector<2x1x32xf32>
      tpu.vector_store %arg5[%c0_33, %c0_34, %c0_35], %37 {strides = array<i32>} : memref<2x1x32xf32, #tpu.memory_space<vmem>>, vector<2x1x32xf32>,
    } else {
    }
    %c0_i32_2 = arith.constant 0 : i32
    %5 = arith.cmpi eq, %arg2, %c0_i32_2 : i32
    %6 = arith.extui %5 : i1 to i32
    %c0_i32_3 = arith.constant 0 : i32
    %7 = arith.cmpi ne, %6, %c0_i32_3 : i32
    scf.if %7 {
      %c0_32 = arith.constant 0 : index
      %c0_33 = arith.constant 0 : index
      %c0_34 = arith.constant 0 : index
      %37 = vector.load %arg3[%c0_32, %c0_33, %c0_34] : memref<2x8x32xbf16, #tpu.memory_space<vmem>>, vector<2x8x32xbf16>
      %38 = arith.extf %37 : vector<2x8x32xbf16> to vector<2x8x32xf32>
      %cst_35 = arith.constant 0.353553385 : f32
      %39 = vector.broadcast %cst_35 : f32 to vector<2x8x32xf32>
      %40 = arith.mulf %38, %39 : vector<2x8x32xf32>
      %41 = arith.truncf %40 : vector<2x8x32xf32> to vector<2x8x32xbf16>
      %c0_36 = arith.constant 0 : index
      %c0_37 = arith.constant 0 : index
      %c0_38 = arith.constant 0 : index
      %42 = vector.load %arg6[%c0_36, %c0_37, %c0_38] : memref<2x8x32xbf16, #tpu.memory_space<vmem>>, vector<2x8x32xbf16>
      tpu.vector_store %arg6[%c0_36, %c0_37, %c0_38], %41 {strides = array<i32>} : memref<2x8x32xbf16, #tpu.memory_space<vmem>>, vector<2x8x32xbf16>,
      %cst_39 = arith.constant 0xFF800000 : f32
      %43 = vector.broadcast %cst_39 : f32 to vector<2x8x1xf32>
      %c0_40 = arith.constant 0 : index
      %c0_41 = arith.constant 0 : index
      %c0_42 = arith.constant 0 : index
      %44 = vector.load %arg7[%c0_40, %c0_41, %c0_42] : memref<2x8x1xf32, #tpu.memory_space<vmem>>, vector<2x8x1xf32>
      tpu.vector_store %arg7[%c0_40, %c0_41, %c0_42], %43 {strides = array<i32>} : memref<2x8x1xf32, #tpu.memory_space<vmem>>, vector<2x8x1xf32>,
      %cst_43 = arith.constant 0.000000e+00 : f32
      %45 = vector.broadcast %cst_43 : f32 to vector<2x8x1xf32>
      %c0_44 = arith.constant 0 : index
      %c0_45 = arith.constant 0 : index
      %c0_46 = arith.constant 0 : index
      %46 = vector.load %arg8[%c0_44, %c0_45, %c0_46] : memref<2x8x1xf32, #tpu.memory_space<vmem>>, vector<2x8x1xf32>
      tpu.vector_store %arg8[%c0_44, %c0_45, %c0_46], %45 {strides = array<i32>} : memref<2x8x1xf32, #tpu.memory_space<vmem>>, vector<2x8x1xf32>,
      %cst_47 = arith.constant 0.000000e+00 : f32
      %47 = vector.broadcast %cst_47 : f32 to vector<2x8x32xf32>
      %c0_48 = arith.constant 0 : index
      %c0_49 = arith.constant 0 : index
      %c0_50 = arith.constant 0 : index
      %48 = vector.load %arg9[%c0_48, %c0_49, %c0_50] : memref<2x8x32xf32, #tpu.memory_space<vmem>>, vector<2x8x32xf32>
      tpu.vector_store %arg9[%c0_48, %c0_49, %c0_50], %47 {strides = array<i32>} : memref<2x8x32xf32, #tpu.memory_space<vmem>>, vector<2x8x32xf32>,
    } else {
    }
    %c0 = arith.constant 0 : index
    %c0_4 = arith.constant 0 : index
    %c0_5 = arith.constant 0 : index
    %8 = vector.load %arg6[%c0, %c0_4, %c0_5] : memref<2x8x32xbf16, #tpu.memory_space<vmem>>, vector<2x8x32xbf16>
    %c0_6 = arith.constant 0 : index
    %c0_7 = arith.constant 0 : index
    %c0_8 = arith.constant 0 : index
    %9 = vector.load %arg4[%c0_6, %c0_7, %c0_8] : memref<2x8x32xbf16, #tpu.memory_space<vmem>>, vector<2x8x32xbf16>
    %cst = arith.constant dense<0.000000e+00> : vector<2x8x8xf32>
    %10 = tpu.matmul %8, %9, %cst {dimension_numbers = #tpu.dot_dimension_numbers<[2], [2], [1], [1], [0, 0, 0, 1, 1, 1], [0], [0]>} : vector<2x8x32xbf16>, vector<2x8x32xbf16>, vector<2x8x8xf32> -> vector<2x8x8xf32>
    %c0_9 = arith.constant 0 : index
    %c0_10 = arith.constant 0 : index
    %c0_11 = arith.constant 0 : index
    %11 = vector.load %arg7[%c0_9, %c0_10, %c0_11] : memref<2x8x1xf32, #tpu.memory_space<vmem>>, vector<2x8x1xf32>
    %cst_12 = arith.constant dense<0xFF800000> : vector<2x8xf32>
    %12 = vector.multi_reduction <maximumf>, %10, %cst_12 [2] : vector<2x8x8xf32> to vector<2x8xf32>
    %13 = vector.shape_cast %12 : vector<2x8xf32> to vector<2x8x1xf32>
    %14 = arith.maximumf %11, %13 : vector<2x8x1xf32>
    %15 = arith.subf %11, %14 : vector<2x8x1xf32>
    %16 = math.exp %15 : vector<2x8x1xf32>
    %17 = vector.broadcast %14 : vector<2x8x1xf32> to vector<2x8x8xf32>
    %18 = arith.subf %10, %17 : vector<2x8x8xf32>
    %19 = math.exp %18 : vector<2x8x8xf32>
    %c0_13 = arith.constant 0 : index
    %c0_14 = arith.constant 0 : index
    %c0_15 = arith.constant 0 : index
    %20 = vector.load %arg8[%c0_13, %c0_14, %c0_15] : memref<2x8x1xf32, #tpu.memory_space<vmem>>, vector<2x8x1xf32>
    %21 = arith.mulf %16, %20 : vector<2x8x1xf32>
    %cst_16 = arith.constant dense<0.000000e+00> : vector<2x8xf32>
    %22 = vector.multi_reduction <add>, %19, %cst_16 [2] : vector<2x8x8xf32> to vector<2x8xf32>
    %23 = vector.shape_cast %22 : vector<2x8xf32> to vector<2x8x1xf32>
    %24 = arith.addf %21, %23 : vector<2x8x1xf32>
    %c0_17 = arith.constant 0 : index
    %c0_18 = arith.constant 0 : index
    %c0_19 = arith.constant 0 : index
    %25 = vector.load %arg8[%c0_17, %c0_18, %c0_19] : memref<2x8x1xf32, #tpu.memory_space<vmem>>, vector<2x8x1xf32>
    tpu.vector_store %arg8[%c0_17, %c0_18, %c0_19], %24 {strides = array<i32>} : memref<2x8x1xf32, #tpu.memory_space<vmem>>, vector<2x8x1xf32>,
    %26 = arith.truncf %19 : vector<2x8x8xf32> to vector<2x8x8xbf16>
    %cst_20 = arith.constant dense<0.000000e+00> : vector<2x8x32xf32>
    %27 = tpu.matmul %26, %9, %cst_20 {dimension_numbers = #tpu.dot_dimension_numbers<[2], [1], [1], [2], [0, 0, 0, 1, 1, 2], [0], [0]>} : vector<2x8x8xbf16>, vector<2x8x32xbf16>, vector<2x8x32xf32> -> vector<2x8x32xf32>
    %c0_21 = arith.constant 0 : index
    %c0_22 = arith.constant 0 : index
    %c0_23 = arith.constant 0 : index
    %28 = vector.load %arg9[%c0_21, %c0_22, %c0_23] : memref<2x8x32xf32, #tpu.memory_space<vmem>>, vector<2x8x32xf32>
    %29 = vector.broadcast %16 : vector<2x8x1xf32> to vector<2x8x32xf32>
    %30 = arith.mulf %29, %28 : vector<2x8x32xf32>
    %31 = arith.addf %30, %27 : vector<2x8x32xf32>
    %c0_24 = arith.constant 0 : index
    %c0_25 = arith.constant 0 : index
    %c0_26 = arith.constant 0 : index
    %32 = vector.load %arg9[%c0_24, %c0_25, %c0_26] : memref<2x8x32xf32, #tpu.memory_space<vmem>>, vector<2x8x32xf32>
    tpu.vector_store %arg9[%c0_24, %c0_25, %c0_26], %31 {strides = array<i32>} : memref<2x8x32xf32, #tpu.memory_space<vmem>>, vector<2x8x32xf32>,
    %c0_27 = arith.constant 0 : index
    %c0_28 = arith.constant 0 : index
    %c0_29 = arith.constant 0 : index
    %33 = vector.load %arg7[%c0_27, %c0_28, %c0_29] : memref<2x8x1xf32, #tpu.memory_space<vmem>>, vector<2x8x1xf32>
    tpu.vector_store %arg7[%c0_27, %c0_28, %c0_29], %14 {strides = array<i32>} : memref<2x8x1xf32, #tpu.memory_space<vmem>>, vector<2x8x1xf32>,
    %c0_i32_30 = arith.constant 0 : i32
    %34 = arith.cmpi eq, %arg2, %c0_i32_30 : i32
    %35 = arith.extui %34 : i1 to i32
    %c0_i32_31 = arith.constant 0 : i32
    %36 = arith.cmpi ne, %35, %c0_i32_31 : i32
    scf.if %36 {
      %c0_32 = arith.constant 0 : index
      %c0_33 = arith.constant 0 : index
      %c0_34 = arith.constant 0 : index
      %37 = vector.load %arg9[%c0_32, %c0_33, %c0_34] : memref<2x8x32xf32, #tpu.memory_space<vmem>>, vector<2x8x32xf32>
      %c0_35 = arith.constant 0 : index
      %c0_36 = arith.constant 0 : index
      %c0_37 = arith.constant 0 : index
      %38 = vector.load %arg8[%c0_35, %c0_36, %c0_37] : memref<2x8x1xf32, #tpu.memory_space<vmem>>, vector<2x8x1xf32>
      %39 = tpu.reciprocal %38 : vector<2x8x1xf32> -> vector<2x8x1xf32>
      %40 = vector.broadcast %39 : vector<2x8x1xf32> to vector<2x8x32xf32>
      %41 = arith.mulf %37, %40 : vector<2x8x32xf32>
      %c0_38 = arith.constant 0 : index
      %c0_39 = arith.constant 0 : index
      %c0_40 = arith.constant 0 : index
      %42 = vector.load %arg5[%c0_38, %c0_39, %c0_40] : memref<2x1x32xf32, #tpu.memory_space<vmem>>, vector<2x1x32xf32>
      %cst_41 = arith.constant dense<0xFF800000> : vector<2x32xf32>
      %43 = vector.multi_reduction <maximumf>, %41, %cst_41 [1] : vector<2x8x32xf32> to vector<2x32xf32>
      %44 = vector.shape_cast %43 : vector<2x32xf32> to vector<2x1x32xf32>
      %45 = arith.maximumf %42, %44 : vector<2x1x32xf32>
      %c0_42 = arith.constant 0 : index
      %c0_43 = arith.constant 0 : index
      %c0_44 = arith.constant 0 : index
      %46 = vector.load %arg5[%c0_42, %c0_43, %c0_44] : memref<2x1x32xf32, #tpu.memory_space<vmem>>, vector<2x1x32xf32>
      tpu.vector_store %arg5[%c0_42, %c0_43, %c0_44], %45 {strides = array<i32>} : memref<2x1x32xf32, #tpu.memory_space<vmem>>, vector<2x1x32xf32>,
    } else {
    }
    return
  }
  func.func @transform_0(%arg0: i32, %arg1: i32, %arg2: i32) -> (i32, i32, i32) {
    %c0_i32 = arith.constant 0 : i32
    %c0_i32_0 = arith.constant 0 : i32
    return %arg0, %arg1, %c0_i32 : i32, i32, i32
  }
  func.func @transform_1(%arg0: i32, %arg1: i32, %arg2: i32) -> (i32, i32, i32) {
    %c0_i32 = arith.constant 0 : i32
    %c0_i32_0 = arith.constant 0 : i32
    return %arg0, %arg2, %c0_i32 : i32, i32, i32
  }
  func.func @transform_2(%arg0: i32, %arg1: i32, %arg2: i32) -> (i32, i32, i32) {
    %c0_i32 = arith.constant 0 : i32
    %c0_i32_0 = arith.constant 0 : i32
    %c0_i32_1 = arith.constant 0 : i32
    return %arg0, %c0_i32, %c0_i32_0 : i32, i32, i32
  }
}

</mosaic_0001>

<bundles_post_ra>
// kernel: tpu_custom_call.1
= control target key start
LH: loop header
LB: loop body
LE: loop exit
PB: predicated region body
PF: predicated region fallthrough
CT: control target
= control target key end

     0   :  { %7 = vsyncpa [#allocation7], 0  ;;  %s621_s0 = inlined_call_operand.hbm [shape: bf16[2,8,32], index: 0, kind: input, shape index: {}]   ;;  %s622_s1 = inlined_call_operand.hbm [shape: bf16[2,8,32], index: 1, kind: input, shape index: {}]   ;;  %s623_s2 = inlined_call_operand.hbm [shape: f32[2,1,32], index: 2, kind: output, shape index: {}]  }
   0x1   :  { %8 = vsyncpa [#allocation10], 0 }
   0x2   :  { %9 = vsyncpa [#allocation8], 0  ;;  %s527_s9 = smov [#allocation6]   ;;  %s455_s13 = scalar_lea.hbm %s621_s0, 128 }
   0x3   :  { %s15_s10 = sshll.u32 %s527_s9, 4  ;;  %p456_p0 = scmp.ne.s32.totalorder %s621_s0, %s455_s13  ;;  %s16_s10 = int_to_ptr.vmem [resolvable:$true] %s15_s10 }
   0x4   :  { %p459_p1 = scmp.lt.u32.totalorder %s455_s13, %s621_s0 }
   0x6   :  { %p461_p2 = pnand %p459_p1, %p456_p0 }
   0x8   :  { %464 = shalt.err (!%p461_p2)
}
   0x9   :  { %s465_s18 = scalar_lea.vmem %s16_s10, 128  ;;  %p470_p4 = scmp.lt.s32.totalorder %s16_s10, %s16_s10 }
   0xa   :  { %p466_p3 = scmp.ne.s32.totalorder %s16_s10, %s465_s18  ;;  %p471_p5 = scmp.lt.s32.totalorder %s465_s18, %s465_s18 }
   0xc   :  { %p472_p6 = por %p471_p5, %p470_p4 }
   0xe   :  { %p473_p7 = pnand %p472_p6, %p466_p3 }
  0x10   :  { %476 = shalt.err (!%p473_p7)
}
  0x11   :  { %s528_s19 = smov 64   ;;  %s529_s20 = smov 4  }
  0x12   :  { %21 = dma.hbm_to_vmem [thread:$0]  %s621_s0, 128, %s16_s10, [#allocation7], %s528_s19, %s528_s19, %s529_s20  }
  0x13   :  { %s530_s23 = smov [#allocation9]   ;;  %s477_s27 = scalar_lea.hbm %s622_s1, 128 }
  0x14   :  { %s27_s24 = sshll.u32 %s530_s23, 4  ;;  %p478_p8 = scmp.ne.s32.totalorder %s622_s1, %s477_s27  ;;  %s28_s24 = int_to_ptr.vmem [resolvable:$true] %s27_s24 }
  0x15   :  { %p481_p9 = scmp.lt.u32.totalorder %s477_s27, %s622_s1 }
  0x17   :  { %p483_p10 = pnand %p481_p9, %p478_p8 }
  0x19   :  { %486 = shalt.err (!%p483_p10)
}
  0x1a   :  { %s487_s4 = scalar_lea.vmem %s28_s24, 128  ;;  %p492_p12 = scmp.lt.s32.totalorder %s28_s24, %s28_s24 }
  0x1b   :  { %p488_p11 = scmp.ne.s32.totalorder %s28_s24, %s487_s4  ;;  %p493_p13 = scmp.lt.s32.totalorder %s487_s4, %s487_s4 }
  0x1d   :  { %p494_p0 = por %p493_p13, %p492_p12 }
  0x1f   :  { %p495_p1 = pnand %p494_p0, %p488_p11 }
  0x21   :  { %498 = shalt.err (!%p495_p1)
}
  0x22   :  { %33 = dma.hbm_to_vmem [thread:$0]  %s622_s1, 128, %s28_s24, [#allocation10], %s528_s19, %s528_s19, %s529_s20  }
  0x23   :  { %521 = dma.done.wait [#allocation7], 128  }
  0x24   :  { %522 = vsyncadd [#allocation7], 4294967168 }
  0x25   :  { %523 = dma.done.wait [#allocation10], 128  }
  0x26   :  { %524 = vsyncadd [#allocation10], 4294967168  ;;  %vm69_vm0 = vcmask 261120   ;;  %v531_v0 = vmov 0.0   ;;  %vm532_vm1 = vmmov 0   ;;  %v395_v3 = vld [vmem:[#allocation6] sm:$0xff]  }
  0x27   :  { %406 = vmatprep.subr.bf16.mxu0 %v531_v0  ;;  %70 = vst.msk [vmem:[#allocation5] sm:$0xff] %vm69_vm0, %v531_v0  ;;  %71 = vst.msk [vmem:[#allocation5 + $0x8] sm:$0xff] %vm69_vm0, %v531_v0  ;;  %412 = vmatprep.subr.bf16.mxu1 %v531_v0  ;;  %v74_v1 = vld [vmem:[#allocation9] sm:$0xf]  ;;  %v75_v2 = vld [vmem:[#allocation9 + $0x4] sm:$0xf]  ;;  %v396_v6 = vunpack.c.l.bf16 %v395_v3  ;;  %v397_v7 = vunpack.c.h.bf16 %v395_v3 }
  0x28   :  { %408 = vmatprep.mubr.msk.bf16.mxu0 %vm532_vm1, %v531_v0  ;;  %414 = vmatprep.mubr.msk.bf16.mxu1 %vm532_vm1, %v531_v0  ;;  %v81_v4 = vsel %vm69_vm0, %v74_v1, 0  ;;  %v127_v5 = vsel %vm69_vm0, %v75_v2, 0  ;;  %vm61_vm2 = vcmask 257024   ;;  %vm222_vm3 = vcmask 1043456   ;;  %s535_s1 = smov [#allocation11]  }
  0x29   :  { %407 = vmatpush3.bf16.xpose.msra.mxu0 %v81_v4  ;;  %413 = vmatpush3.bf16.xpose.msra.mxu1 %v127_v5  ;;  %v57_v8 = vmul.f32 0.35355338, %v396_v6  ;;  %v58_v9 = vmul.f32 0.35355338, %v397_v7  ;;  %v223_v12 = vsel %vm222_vm3, %v74_v1, 0  ;;  %v268_v13 = vsel %vm222_vm3, %v75_v2, 0 }
  0x2a   :  { %418 = vmatprep.subr.bf16.mxu0 %v531_v0  ;;  %424 = vmatprep.subr.bf16.mxu1 %v531_v0  ;;  %vm64_vm4 = vcmask 7168   ;;  %v533_v16 = vmov -inf   ;;  %vm171_vm5 = vcmask 64512   ;;  %v534_v27 = vmov 0   ;;  %s377_s6 = sshll.u32 %s535_s1, 4  ;;  %s378_s6 = int_to_ptr.vmem [resolvable:$true] %s377_s6 }
  0x2b   :  { %v59_v10 = vpack.c.bf16 %v57_v8, %v57_v8  ;;  %v60_v11 = vpack.c.bf16 %v58_v9, %v58_v9  ;;  %65 = vst.msk [vmem:[#allocation3] sm:$0xff] %vm64_vm4, %v533_v16  ;;  %66 = vst.msk [vmem:[#allocation3 + $0x8] sm:$0xff] %vm64_vm4, %v533_v16  ;;  %441 = vset.pattern.permute.xlu1 %v534_v27  ;;  %442 = vset.pattern.permute.xlu0 %v534_v27  ;;  %vm47_vm6 = vcmask 253952   ;;  %s499_s7 = scalar_lea.vmem %s378_s6, 32  ;;  %p504_p3 = scmp.lt.s32.totalorder %s378_s6, %s378_s6 }
  0x2c   :  { %67 = vst.msk [vmem:[#allocation4] sm:$0xff] %vm64_vm4, %v531_v0  ;;  %68 = vst.msk [vmem:[#allocation4 + $0x8] sm:$0xff] %vm64_vm4, %v531_v0  ;;  %p500_p2 = scmp.ne.s32.totalorder %s378_s6, %s499_s7  ;;  %p505_p4 = scmp.lt.s32.totalorder %s499_s7, %s499_s7 }
  0x2d   :  { %62 = vst.msk [vmem:[#allocation2] sm:$0xf] %vm61_vm2, %v59_v10  ;;  %63 = vst.msk [vmem:[#allocation2 + $0x4] sm:$0xf] %vm61_vm2, %v60_v11 }
  0x2e   :  { %48 = vst.msk [vmem:[#allocation11] sm:$0x1] %vm47_vm6, %v533_v16  ;;  %49 = vst.msk [vmem:[#allocation11 + $0x1] sm:$0x1] %vm47_vm6, %v533_v16  ;;  %v311_v3 = vld [vmem:[#allocation5 + $0x8] sm:$0xff]  ;;  %p506_p5 = por %p505_p4, %p504_p3 }
  0x30   :  { %p507_p6 = pnand %p506_p5, %p500_p2 }
  0x32   :  { %v169_v28 = vld [vmem:[#allocation3] sm:$0xff]  ;;  %v170_v31 = vld [vmem:[#allocation3 + $0x8] sm:$0xff] }
  0x33   :  { %v202_v52 = vld [vmem:[#allocation4] sm:$0xff]  ;;  %v203_v55 = vld [vmem:[#allocation4 + $0x8] sm:$0xff] }
  0x34   :  { %v72_v14 = vld [vmem:[#allocation2] sm:$0xf]  ;;  %v73_v15 = vld [vmem:[#allocation2 + $0x4] sm:$0xf] }
  0x35   :  { %409 = vmatmul.mubr.msk.bf16.vlgmr.msra.gmra.mrb[0].mxu0 %vm69_vm0, %v72_v14  ;;  %415 = vmatmul.mubr.msk.bf16.vlgmr.msra.gmra.mrb[0].mxu1 %vm69_vm0, %v73_v15 }
  0x36   :  { %419 = vmatpush3.bf16.msra.mxu0 %v223_v12  ;;  %420 = vmatprep.mubr.msk.bf16.mxu0 %vm532_vm1, %v531_v0 }
  0x37   :  { %425 = vmatpush3.bf16.msra.mxu1 %v268_v13  ;;  %426 = vmatprep.mubr.msk.bf16.mxu1 %vm532_vm1, %v531_v0  ;;  %v310_v0 = vld [vmem:[#allocation5] sm:$0xff] }
 0x108   :  { %v117_v17 = vpop.f32.mrb[0].mxu0  ;;  %v163_v18 = vpop.f32.mrb[0].mxu1 }
 0x109   :  { %v410_v19 = vpop.f32.mrb[1].mxu0  ;;  %v416_v20 = vpop.f32.mrb[1].mxu1  ;;  %v172_v21 = vsel %vm171_vm5, %v117_v17, -inf  ;;  %v175_v26 = vsel %vm171_vm5, %v163_v18, -inf }
 0x10a   :  { %173 = vmax.xlane.f32.xlu0 %v172_v21  ;;  %v120_v22 = vpop.f32.mrb[2].mxu0  ;;  %v166_v23 = vpop.f32.mrb[2].mxu1 }
 0x10b   :  { %v411_v24 = vpop.f32.mrb[3].mxu0  ;;  %v417_v25 = vpop.f32.mrb[3].mxu1 }
 0x10e   :  { %176 = vmax.xlane.f32.xlu0 %v175_v26 }
 0x197   :  { %v174_v29 = vpop.xlane.xlu0 %173 }
 0x198   :  { %v178_v30 = vmax.f32 %v169_v28, %v174_v29 }
 0x19a   :  { %v180_v32 = vsub.f32 %v169_v28, %v178_v30  ;;  %328 = vst.msk [vmem:[#allocation3] sm:$0xff] %vm64_vm4, %v178_v30  ;;  %188 = vperm.xlu1 %441, %v178_v30  }
 0x19b   :  { %v177_v33 = vpop.xlane.xlu0 %176 }
 0x19c   :  { %v179_v34 = vmax.f32 %v170_v31, %v177_v33  ;;  %v182_v49 = vmul.f32 1.442695, %v180_v32  ;;  %v351_v32 = vld [vmem:[#allocation11] sm:$0x1] }
 0x19e   :  { %v181_v35 = vsub.f32 %v170_v31, %v179_v34  ;;  %329 = vst.msk [vmem:[#allocation3 + $0x8] sm:$0xff] %vm64_vm4, %v179_v34  ;;  %193 = vperm.xlu1 %441, %v179_v34  }
 0x1a0   :  { %v184_v48 = vmul.f32 1.442695, %v181_v35 }
 0x219   :  { %v189_v36 = vpop.permute.xlu1 %188 }
 0x21a   :  { %v196_v37 = vsub.f32 %v117_v17, %v189_v36 }
 0x21c   :  { %v198_v38 = vmul.f32 1.442695, %v196_v37  ;;  %v352_v37 = vld [vmem:[#allocation11 + $0x1] sm:$0x1] }
 0x21d   :  { %v194_v39 = vpop.permute.xlu1 %193 }
 0x21e   :  { %443 = vpow2.f32 %v198_v38  ;;  %v197_v40 = vsub.f32 %v163_v18, %v194_v39 }
 0x220   :  { %v200_v41 = vmul.f32 1.442695, %v197_v40 }
 0x222   :  { %445 = vpow2.f32 %v200_v41 }
 0x223   :  { %447 = vpow2.f32 %v184_v48 }
 0x224   :  { %449 = vpow2.f32 %v182_v49 }
 0x228   :  { %v444_v42 = vpop.eup %443 }
 0x229   :  { %v206_v43 = vsel %vm171_vm5, %v444_v42, 0.0  ;;  %v217_v44 = vpack.c.bf16 %v444_v42, %v444_v42 }
 0x22a   :  { %207 = vadd.xlane.f32.xlu0 %v206_v43 }
 0x22b   :  { %421 = vmatmul.mubr.msk.bf16.vlgmr.msra.gmra.mrb[4].mxu0 %vm171_vm5, %v217_v44 }
 0x22c   :  { %v446_v45 = vpop.eup %445 }
 0x22d   :  { %v209_v46 = vsel %vm171_vm5, %v446_v45, 0.0  ;;  %v218_v47 = vpack.c.bf16 %v446_v45, %v446_v45  ;;  %v448_v50 = vpop.eup %447 }
 0x22e   :  { %210 = vadd.xlane.f32.xlu1 %v209_v46  ;;  %v450_v51 = vpop.eup %449  ;;  %v205_v57 = vmul.f32 %v448_v50, %v203_v55 }
 0x22f   :  { %427 = vmatmul.mubr.msk.bf16.vlgmr.msra.gmra.mrb[4].mxu1 %vm171_vm5, %v218_v47  ;;  %v204_v53 = vmul.f32 %v450_v51, %v202_v52 }
 0x23f   :  { %319 = vperm.xlu1 %441, %v448_v50  }
 0x240   :  { %314 = vperm.xlu0 %442, %v450_v51  }
 0x2b7   :  { %v208_v54 = vpop.xlane.xlu0 %207 }
 0x2b8   :  { %v212_v56 = vadd.f32 %v208_v54, %v204_v53 }
 0x2ba   :  { %215 = vst.msk [vmem:[#allocation4] sm:$0xff] %vm64_vm4, %v212_v56 }
 0x2bb   :  { %v211_v58 = vpop.xlane.xlu1 %210 }
 0x2bc   :  { %v213_v59 = vadd.f32 %v211_v58, %v205_v57 }
 0x2be   :  { %216 = vst.msk [vmem:[#allocation4 + $0x8] sm:$0xff] %vm64_vm4, %v213_v59 }
 0x2bf   :  { %v315_v1 = vpop.permute.xlu0 %314  ;;  %v320_v4 = vpop.permute.xlu1 %319 }
 0x2c0   :  { %v322_v2 = vmul.f32 %v315_v1, %v310_v0  ;;  %v323_v9 = vmul.f32 %v320_v4, %v311_v3 }
 0x2c1   :  { %v335_v60 = vld [vmem:[#allocation4] sm:$0xff] }
 0x2c2   :  { %451 = vrcp.f32 %v335_v60 }
 0x2c5   :  { %v336_v61 = vld [vmem:[#allocation4 + $0x8] sm:$0xff] }
 0x2c6   :  { %453 = vrcp.f32 %v336_v61 }
 0x2cc   :  { %v452_v62 = vpop.eup %451 }
 0x2cd   :  { %341 = vperm.xlu0 %442, %v452_v62  }
 0x2d0   :  { %v454_v63 = vpop.eup %453 }
 0x2d1   :  { %346 = vperm.xlu0 %442, %v454_v63  }
 0x2fe   :  { %v259_v5 = vpop.f32.mrb[4].mxu0 }
 0x2ff   :  { %v324_v6 = vadd.f32 %v322_v2, %v259_v5  ;;  %v422_v7 = vpop.f32.mrb[5].mxu0 }
 0x300   :  { %v262_v8 = vpop.f32.mrb[6].mxu0 }
 0x301   :  { %326 = vst.msk [vmem:[#allocation5] sm:$0xff] %vm69_vm0, %v324_v6  ;;  %v423_v10 = vpop.f32.mrb[7].mxu0 }
 0x302   :  { %v304_v11 = vpop.f32.mrb[4].mxu1 }
 0x303   :  { %v325_v12 = vadd.f32 %v323_v9, %v304_v11  ;;  %v428_v13 = vpop.f32.mrb[5].mxu1 }
 0x304   :  { %v307_v14 = vpop.f32.mrb[6].mxu1 }
 0x305   :  { %327 = vst.msk [vmem:[#allocation5 + $0x8] sm:$0xff] %vm69_vm0, %v325_v12  ;;  %v429_v15 = vpop.f32.mrb[7].mxu1 }
 0x308   :  { %v333_v17 = vld [vmem:[#allocation5] sm:$0xff] }
 0x30c   :  { %v334_v21 = vld [vmem:[#allocation5 + $0x8] sm:$0xff] }
 0x34c   :  { %v342_v16 = vpop.permute.xlu0 %341 }
 0x34d   :  { %v349_v18 = vmul.f32 %v342_v16, %v333_v17 }
 0x34f   :  { %v353_v19 = vsel %vm69_vm0, %v349_v18, -inf }
 0x350   :  { %v354_v20 = vrot.slane %v353_v19, 4  ;;  %v347_v22 = vpop.permute.xlu0 %346 }
 0x351   :  { %v350_v23 = vmul.f32 %v347_v22, %v334_v21 }
 0x352   :  { %v355_v24 = vmax.f32 %v353_v19, %v354_v20 }
 0x353   :  { %v360_v25 = vsel %vm69_vm0, %v350_v23, -inf }
 0x354   :  { %v356_v26 = vrot.slane %v355_v24, 2  ;;  %v361_v27 = vrot.slane %v360_v25, 4 }
 0x356   :  { %v357_v28 = vmax.f32 %v355_v24, %v356_v26  ;;  %v362_v29 = vmax.f32 %v360_v25, %v361_v27 }
 0x358   :  { %v358_v30 = vrot.slane %v357_v28, 1  ;;  %v363_v31 = vrot.slane %v362_v29, 2 }
 0x35a   :  { %v359_v33 = vmax.f32 %v357_v28, %v358_v30  ;;  %v364_v34 = vmax.f32 %v362_v29, %v363_v31 }
 0x35c   :  { %v367_v35 = vmax.f32 %v351_v32, %v359_v33  ;;  %v365_v36 = vrot.slane %v364_v34, 1 }
 0x35e   :  { %370 = vst.msk [vmem:[#allocation11] sm:$0x1] %vm47_vm6, %v367_v35  ;;  %v366_v38 = vmax.f32 %v364_v34, %v365_v36 }
 0x360   :  { %v368_v39 = vmax.f32 %v352_v37, %v366_v38 }
 0x362   :  { %371 = vst.msk [vmem:[#allocation11 + $0x1] sm:$0x1] %vm47_vm6, %v368_v39 }
 0x363   :  { %510 = shalt.err (!%p507_p6)
}
 0x364   :  { %s511_s10 = scalar_lea.hbm %s623_s2, 32 }
 0x365   :  { %p512_p7 = scmp.ne.s32.totalorder %s623_s2, %s511_s10  ;;  %p515_p8 = scmp.lt.u32.totalorder %s511_s10, %s623_s2 }
 0x367   :  { %p517_p9 = pnand %p515_p8, %p512_p7 }
 0x369   :  { %520 = shalt.err (!%p517_p9)
}
 0x36a   :  { %s536_s15 = smov 16   ;;  %s537_s16 = smov 1  }
 0x36b   :  { %383 = dma.vmem_to_hbm [thread:$0]  %s378_s6, 32, %s623_s2, [#allocation8], %s536_s15, %s536_s15, %s537_s16  }
 0x36c   :  { %525 = dma.done.wait [#allocation8], 32  }
 0x36d   :  { %526 = vsyncadd [#allocation8], 4294967264 }
 0x36e   :  { %387 = vsyncpa [#allocation7], 1 }
 0x36f   :  { %388 = vsyncpa [#allocation10], 1 }
 0x370   :  { %389 = vsyncpa [#allocation8], 1 }

</bundles_post_ra>
